<compile_context>
chip_gen: v5e
topology: v5e:2x2
jax: 0.10.0
libtpu: 0.0.40
codegen_flags: <defaults>
</compile_context>

<pallas_src>
import jax
import jax.numpy as jnp
from jax.experimental import pallas as pl
from jax.experimental.pallas import tpu as pltpu


def _identity_kernel(x_ref, o_ref):
    # Full-tile elementwise copy (pure load/store path).
    o_ref[...] = x_ref[...]


_SUBLANE = 8
_LANE = 128
# Per-buffer tile budget.  Pallas double-buffers input and output, so the
# worst-case VMEM working set is ~4 * _TILE_BYTES = 8 MiB — inside the
# 16 MiB scoped default of v5e and far inside v6e (128 MiB) / v7x (64 MiB).
_TILE_BYTES = 2 * 1024 * 1024


def _row_tile(rows, cols, itemsize):
    """Largest multiple-of-8 divisor of `rows` whose (tile, cols) slab fits the budget."""
    max_rows = max(_SUBLANE, _TILE_BYTES // max(1, cols * itemsize))
    max_rows = max(_SUBLANE, (max_rows // _SUBLANE) * _SUBLANE)
    tile = min(rows, 512, max_rows)
    tile = max(_SUBLANE, (tile // _SUBLANE) * _SUBLANE)
    # Shrink (in multiples of 8) until the tile evenly divides rows.
    while tile > _SUBLANE and rows % tile != 0:
        tile -= _SUBLANE
    if tile <= 0 or rows % tile != 0:
        tile = rows
    return tile


def _identity_copy_2d(x2d):
    rows, cols = x2d.shape
    itemsize = jnp.dtype(x2d.dtype).itemsize

    if rows % _SUBLANE == 0 and cols % _LANE == 0:
        # Lane-dense tiling: full cols on the 128-wide lane axis, rows tiled.
        tile = _row_tile(rows, cols, itemsize)
        grid = (rows // tile,)
        in_spec = pl.BlockSpec((tile, cols), lambda i: (i, 0))
        out_spec = pl.BlockSpec((tile, cols), lambda i: (i, 0))
        # Row tiles are independent → shard across both TCs on v7x.
        dim_sem = ("parallel",)
    else:
        # Ragged fallback: block_shape == full array ⇒ divisibility waived.
        grid = (1,)
        in_spec = pl.BlockSpec((rows, cols), lambda i: (0, 0))
        out_spec = pl.BlockSpec((rows, cols), lambda i: (0, 0))
        dim_sem = ("arbitrary",)

    return pl.pallas_call(
        _identity_kernel,
        out_shape=jax.ShapeDtypeStruct((rows, cols), x2d.dtype),
        grid=grid,
        in_specs=[in_spec],
        out_specs=out_spec,
        # Output may alias the input buffer: when the caller donates the
        # input (e.g. under jit), the copy is elided entirely — the forward
        # is identity, so this is exact.
        input_output_aliases={0: 0},
        compiler_params=pltpu.CompilerParams(dimension_semantics=dim_sem),
    )(x2d)


def simclr_encoder_forward(x):
    """Identity forward of SimCLR_Encoder, run through a Pallas TPU kernel.

    x: (B, C, H, W) array.  Returns an array with the same shape, dtype and
    values.  The (H*W) spatial extent is folded onto the 128-wide lane axis
    and (B*C) onto the sublane/row axis; the reshapes are metadata-only glue.
    """
    B, C, H, W = x.shape
    rows = B * C
    cols = H * W
    x2d = x.reshape(rows, cols)
    out2d = _identity_copy_2d(x2d)
    return out2d.reshape(B, C, H, W)


if __name__ == "__main__":
    key = jax.random.PRNGKey(0)
    # Small NCHW input consistent with an image-encoder forward.
    x = jax.random.normal(key, (2, 4, 16, 16), dtype=jnp.float32)

    y = simclr_encoder_forward(x)
    jax.block_until_ready(y)

    # Forward is identity: verify exact reproduction of semantics.
    assert y.shape == x.shape and y.dtype == x.dtype
    assert bool(jnp.all(y == x))

    # TODO(synk): the unused resnet18 base_encoder parameters are not
    # instantiated since forward() never references them.
    print("KERNEL_OK")
</pallas_src>

<mosaic_0001>
module attributes {stable_mosaic.version = 11 : i64} {
  func.func @_identity_kernel(%arg0: i32, %arg1: memref<8x256xf32, #tpu.memory_space<vmem>>, %arg2: memref<8x256xf32, #tpu.memory_space<vmem>>) attributes {dimension_semantics = [#tpu.dimension_semantics<parallel>], iteration_bounds = array<i64: 1>, scalar_prefetch = 0 : i64, scratch_operands = 0 : i64, tpu.core_type = #tpu.core_type<tc>, window_params = [{transform_indices = @transform_0, window_bounds = array<i64: 8, 256>}, {transform_indices = @transform_1, window_bounds = array<i64: 8, 256>}]} {
    %c0 = arith.constant 0 : index
    %c0_0 = arith.constant 0 : index
    %0 = vector.load %arg1[%c0, %c0_0] : memref<8x256xf32, #tpu.memory_space<vmem>>, vector<8x256xf32>
    %c0_1 = arith.constant 0 : index
    %c0_2 = arith.constant 0 : index
    %1 = vector.load %arg2[%c0_1, %c0_2] : memref<8x256xf32, #tpu.memory_space<vmem>>, vector<8x256xf32>
    tpu.vector_store %arg2[%c0_1, %c0_2], %0 {strides = array<i32>} : memref<8x256xf32, #tpu.memory_space<vmem>>, vector<8x256xf32>,
    return
  }
  func.func @transform_0(%arg0: i32) -> (i32, i32) {
    %c0_i32 = arith.constant 0 : i32
    %c0_i32_0 = arith.constant 0 : i32
    return %arg0, %c0_i32 : i32, i32
  }
  func.func @transform_1(%arg0: i32) -> (i32, i32) {
    %c0_i32 = arith.constant 0 : i32
    %c0_i32_0 = arith.constant 0 : i32
    return %arg0, %c0_i32 : i32, i32
  }
}

</mosaic_0001>

<bundles_post_ra>
// kernel: tpu_custom_call.1
= control target key start
LH: loop header
LB: loop body
LE: loop exit
PB: predicated region body
PF: predicated region fallthrough
CT: control target
= control target key end

     0   :  { %6 = vsyncpa [#allocation3], 0  ;;  %s116_s0 = inlined_call_operand.hbm [shape: f32[8,256], index: 0, kind: input, shape index: {}, may-alias: {0,1}]   ;;  %s117_s1 = inlined_call_operand.hbm [shape: f32[8,256], index: 1, kind: output, shape index: {}, may-alias: {0,1}]  }
   0x1   :  { %7 = vsyncpa [#allocation4], 0  ;;  %s13_s8 = sshll.u32 %s116_s0, 4  ;;  %s98_s9 = smov [#allocation2]   ;;  %s14_s8 = int_to_ptr.hbm [resolvable:$true] %s13_s8 }
   0x2   :  { %s15_s10 = sshll.u32 %s98_s9, 4  ;;  %s16_s10 = int_to_ptr.vmem [resolvable:$true] %s15_s10 }
   0x3   :  { %18 = dma.hbm_to_vmem [thread:$0]  %s14_s8, 256, %s16_s10, [#allocation3]  }
   0x4   :  { %94 = dma.done.wait [#allocation3], 256  }
   0x5   :  { %95 = vsyncadd [#allocation3], 4294967040  ;;  %s99_s11 = smov [#allocation5]   ;;  %s34_s15 = sshll.u32 %s117_s1, 4  ;;  %v23_v0 = vld [vmem:[#allocation2] sm:$0xff]  ;;  %v24_v1 = vld [vmem:[#allocation2 + $0x8] sm:$0xff]  ;;  %s35_s15 = int_to_ptr.hbm [resolvable:$true] %s34_s15 }
   0x6   :  { %s32_s12 = sshll.u32 %s99_s11, 4  ;;  %25 = vst [vmem:[#allocation5] sm:$0xff] %v23_v0  ;;  %s33_s12 = int_to_ptr.vmem [resolvable:$true] %s32_s12 }
   0x7   :  { %26 = vst [vmem:[#allocation5 + $0x8] sm:$0xff] %v24_v1 }
   0x8   :  { %37 = dma.vmem_to_hbm [thread:$0]  %s33_s12, 256, %s35_s15, [#allocation4]  }
   0x9   :  { %96 = dma.done.wait [#allocation4], 256  }
   0xa   :  { %97 = vsyncadd [#allocation4], 4294967040 }
   0xb   :  { %42 = vsyncpa [#allocation3], 1 }
   0xc   :  { %43 = vsyncpa [#allocation4], 1 }

</bundles_post_ra>
